<compile_context>
chip_gen: v7x
topology: tpu7x:2x2x1
jax: 0.10.0
libtpu: 0.0.40
codegen_flags: <defaults>
</compile_context>

<pallas_src>
import jax
import jax.numpy as jnp
from jax.experimental import pallas as pl
from jax.experimental.pallas import tpu as pltpu


def _round_up(x, m):
    return (x + m - 1) // m * m


def cg_interaction_mlp_kernel(ne_ref, ori_ref, xec_ref,
                              w1_ref, b1_ref, w2_ref, b2_ref,
                              o_ref):
    """One edge tile: fused fc1 -> SiLU -> gate -> fc2 -> SiLU -> half-sum."""
    te = ne_ref.shape[0]

    # Stack the two halves along M so each layer issues a single MXU matmul
    # with 2*tile rows (amortizes MXU fill/drain; fc2 has K = H = 32 only).
    x = jnp.concatenate([ne_ref[...], ori_ref[...]], axis=0)            # (2*te, D_in)

    # fc1 (+bias): f32 accumulation on the MXU, SiLU in f32 (VPU/EUP).
    h = jnp.dot(x, w1_ref[...], preferred_element_type=jnp.float32) + b1_ref[...]
    h = h * jax.nn.sigmoid(h)

    # Edge gating shared across the two halves, in f32 (avoid 3-D reshape:
    # just duplicate the gate along M to match the stacked halves).
    xec = xec_ref[...].astype(jnp.float32)                              # (te, H)
    gate = jnp.concatenate([xec, xec], axis=0)                          # (2*te, H)
    h = h * gate

    # fc2 (+bias): cast activations back to the compute dtype so the MXU runs
    # native bf16 when bf16 inputs are used; accumulate in f32.
    h = h.astype(w2_ref.dtype)
    y = jnp.dot(h, w2_ref[...], preferred_element_type=jnp.float32) + b2_ref[...]
    y = y * jax.nn.sigmoid(y)

    # Sum the two halves (== y[:E] + y[E:]) and write the tile.
    o_ref[...] = (y[:te] + y[te:]).astype(o_ref.dtype)


def cg_interaction_mlp_forward(node_embed, ori, x_edge_c, w1, b1, w2, b2,
                               sphere_channels_reduce, *,
                               tile_e=1024, compute_dtype=jnp.bfloat16):
    """node_embed, ori: (E, D_in); x_edge_c: (E, H); w1: (D_in, H); w2: (H, D_out).
    Returns (E, D_out // sphere_channels_reduce, sphere_channels_reduce) in f32."""
    E, D_in = node_embed.shape
    H = w1.shape[1]
    D_out = w2.shape[1]

    # Effective tile: big by default, clamped for small E, multiple of 8.
    tile = min(int(tile_e), _round_up(max(E, 8), 8))
    tile = _round_up(tile, 8)
    E_pad = _round_up(E, tile)

    in_bytes = jnp.dtype(compute_dtype).itemsize

    ne = node_embed.astype(compute_dtype)
    orc = ori.astype(compute_dtype)
    xec = x_edge_c.astype(compute_dtype)
    if E_pad != E:
        pad = E_pad - E
        ne = jnp.pad(ne, ((0, pad), (0, 0)))
        orc = jnp.pad(orc, ((0, pad), (0, 0)))
        xec = jnp.pad(xec, ((0, pad), (0, 0)))

    w1c = w1.astype(compute_dtype)
    w2c = w2.astype(compute_dtype)
    b1_2d = b1.reshape(1, H).astype(jnp.float32)
    b2_2d = b2.reshape(1, D_out).astype(jnp.float32)

    grid = (E_pad // tile,)

    # Advisory cost estimate (mem-bound op): 2 halves * E rows per layer.
    flops = 2 * (2 * E_pad) * (D_in * H + H * D_out)
    transcendentals = (2 * E_pad) * (H + D_out)
    bytes_accessed = (
        2 * E_pad * D_in * in_bytes          # node_embed + ori
        + E_pad * H * in_bytes               # x_edge_c
        + (D_in * H + H * D_out) * in_bytes  # weights
        + (H + D_out) * 4                    # biases
        + E_pad * D_out * 4                  # f32 output
    )
    cost = pl.CostEstimate(flops=flops,
                           transcendentals=transcendentals,
                           bytes_accessed=bytes_accessed)

    out = pl.pallas_call(
        cg_interaction_mlp_kernel,
        out_shape=jax.ShapeDtypeStruct((E_pad, D_out), jnp.float32),
        grid_spec=pltpu.PrefetchScalarGridSpec(
            num_scalar_prefetch=0,
            grid=grid,
            in_specs=[
                pl.BlockSpec((tile, D_in), lambda i: (i, 0)),   # node_embed tile
                pl.BlockSpec((tile, D_in), lambda i: (i, 0)),   # ori tile
                pl.BlockSpec((tile, H), lambda i: (i, 0)),      # x_edge_c tile
                pl.BlockSpec((D_in, H), lambda i: (0, 0)),      # W1 (resident)
                pl.BlockSpec((1, H), lambda i: (0, 0)),         # b1
                pl.BlockSpec((H, D_out), lambda i: (0, 0)),     # W2 (resident)
                pl.BlockSpec((1, D_out), lambda i: (0, 0)),     # b2
            ],
            out_specs=pl.BlockSpec((tile, D_out), lambda i: (i, 0)),
        ),
        compiler_params=pltpu.CompilerParams(
            dimension_semantics=("parallel",)),
        cost_estimate=cost,
    )(ne, orc, xec, w1c, b1_2d, w2c, b2_2d)

    out = out[:E]
    return out.reshape(E, D_out // sphere_channels_reduce, sphere_channels_reduce)


def reference_forward(node_embed, ori, x_edge_c, w1, b1, w2, b2, C):
    """Pure-JAX f32 reference mirroring the PyTorch module exactly."""
    E = node_embed.shape[0]
    x = jnp.concatenate([node_embed, ori], axis=0)                 # (2E, D_in)
    h = jax.nn.silu(x @ w1 + b1)                                   # (2E, H)
    h = h.reshape(2, -1, h.shape[-1]) * x_edge_c.reshape(1, -1, h.shape[-1])
    h = h.reshape(-1, h.shape[-1])
    y = jax.nn.silu(h @ w2 + b2)                                   # (2E, D_out)
    y = y.reshape(2 * E, -1, C)
    return y[:E] + y[E:]


if __name__ == "__main__":
    # Small, consistent synthetic config.
    sphere_basis_reduce = 16
    sphere_channels_reduce = 8
    hidden_channel = 32
    edge_num = 64                                                   # > E2 below

    D_in = sphere_basis_reduce * sphere_channels_reduce             # 128
    D_out = sphere_basis_reduce * sphere_channels_reduce            # 128
    H = hidden_channel

    key = jax.random.PRNGKey(0)
    k = jax.random.split(key, 7)
    node_embed = jax.random.normal(k[0], (edge_num, D_in), dtype=jnp.float32)
    ori = jax.random.normal(k[1], (edge_num, D_in), dtype=jnp.float32)
    x_edge_c = jax.random.normal(k[2], (edge_num, H), dtype=jnp.float32)
    # Deterministic "Linear" params (stored as (in, out) so the kernel does x @ W).
    w1 = jax.random.normal(k[3], (D_in, H), dtype=jnp.float32) * 0.05
    b1 = jax.random.normal(k[4], (H,), dtype=jnp.float32) * 0.05
    w2 = jax.random.normal(k[5], (H, D_out), dtype=jnp.float32) * 0.05
    b2 = jax.random.normal(k[6], (D_out,), dtype=jnp.float32) * 0.05

    ref = reference_forward(node_embed, ori, x_edge_c, w1, b1, w2, b2,
                            sphere_channels_reduce)

    # 1) f32 compute path: exact numerics check.
    out_f32 = cg_interaction_mlp_forward(
        node_embed, ori, x_edge_c, w1, b1, w2, b2, sphere_channels_reduce,
        tile_e=1024, compute_dtype=jnp.float32)
    out_f32 = jax.block_until_ready(out_f32)
    assert out_f32.shape == (edge_num, sphere_basis_reduce, sphere_channels_reduce)
    assert jnp.allclose(out_f32, ref, atol=1e-5, rtol=1e-5)

    # 2) bf16 compute path (production config: half the HBM traffic), loose tol.
    out_bf16 = cg_interaction_mlp_forward(
        node_embed, ori, x_edge_c, w1, b1, w2, b2, sphere_channels_reduce,
        tile_e=1024, compute_dtype=jnp.bfloat16)
    out_bf16 = jax.block_until_ready(out_bf16)
    assert out_bf16.shape == (edge_num, sphere_basis_reduce, sphere_channels_reduce)
    assert jnp.allclose(out_bf16, ref, atol=3e-2, rtol=3e-2)

    # 3) Edge count not divisible by 8 / tile (E2 < edge_num, so the slice is
    #    genuine): exercises the padding path inside the wrapper.
    E2 = 20
    ne2, ori2 = node_embed[:E2], ori[:E2]
    xec2 = x_edge_c[:E2]
    assert ne2.shape[0] == E2
    ref2 = reference_forward(ne2, ori2, xec2, w1, b1, w2, b2,
                             sphere_channels_reduce)
    out2 = cg_interaction_mlp_forward(
        ne2, ori2, xec2, w1, b1, w2, b2, sphere_channels_reduce,
        tile_e=1024, compute_dtype=jnp.float32)
    out2 = jax.block_until_ready(out2)
    assert out2.shape == (E2, sphere_basis_reduce, sphere_channels_reduce)
    assert jnp.allclose(out2, ref2, atol=1e-5, rtol=1e-5)

    print("KERNEL_OK")
</pallas_src>

<mosaic_0001>
module attributes {stable_mosaic.version = 11 : i64} {
  func.func @cg_interaction_mlp_kernel(%arg0: i32, %arg1: memref<64x128xf32, #tpu.memory_space<vmem>>, %arg2: memref<64x128xf32, #tpu.memory_space<vmem>>, %arg3: memref<64x32xf32, #tpu.memory_space<vmem>>, %arg4: memref<128x32xf32, #tpu.memory_space<vmem>>, %arg5: memref<1x32xf32, #tpu.memory_space<vmem>>, %arg6: memref<32x128xf32, #tpu.memory_space<vmem>>, %arg7: memref<1x128xf32, #tpu.memory_space<vmem>>, %arg8: memref<64x128xf32, #tpu.memory_space<vmem>>) attributes {dimension_semantics = [#tpu.dimension_semantics<parallel>], iteration_bounds = array<i64: 1>, scalar_prefetch = 0 : i64, scratch_operands = 0 : i64, tpu.core_type = #tpu.core_type<tc>, window_params = [{transform_indices = @transform_0, window_bounds = array<i64: 64, 128>}, {transform_indices = @transform_1, window_bounds = array<i64: 64, 128>}, {transform_indices = @transform_2, window_bounds = array<i64: 64, 32>}, {pipeline_mode = #tpu.pipeline_mode<synchronous>, transform_indices = @transform_3, window_bounds = array<i64: 128, 32>}, {pipeline_mode = #tpu.pipeline_mode<synchronous>, transform_indices = @transform_4, window_bounds = array<i64: 1, 32>}, {pipeline_mode = #tpu.pipeline_mode<synchronous>, transform_indices = @transform_5, window_bounds = array<i64: 32, 128>}, {pipeline_mode = #tpu.pipeline_mode<synchronous>, transform_indices = @transform_6, window_bounds = array<i64: 1, 128>}, {transform_indices = @transform_7, window_bounds = array<i64: 64, 128>}]} {
    %c0 = arith.constant 0 : index
    %c0_0 = arith.constant 0 : index
    %0 = vector.load %arg1[%c0, %c0_0] : memref<64x128xf32, #tpu.memory_space<vmem>>, vector<64x128xf32>
    %c0_1 = arith.constant 0 : index
    %c0_2 = arith.constant 0 : index
    %1 = vector.load %arg2[%c0_1, %c0_2] : memref<64x128xf32, #tpu.memory_space<vmem>>, vector<64x128xf32>
    %2 = tpu.concatenate %0, %1 in 0 : vector<64x128xf32>, vector<64x128xf32> -> vector<128x128xf32>
    %c0_3 = arith.constant 0 : index
    %c0_4 = arith.constant 0 : index
    %3 = vector.load %arg4[%c0_3, %c0_4] : memref<128x32xf32, #tpu.memory_space<vmem>>, vector<128x32xf32>
    %cst = arith.constant dense<0.000000e+00> : vector<128x32xf32>
    %4 = tpu.matmul %2, %3, %cst {dimension_numbers = #tpu.dot_dimension_numbers<[1], [0], [0], [1], [0, 0, 1, 1], [], []>} : vector<128x128xf32>, vector<128x32xf32>, vector<128x32xf32> -> vector<128x32xf32>
    %c0_5 = arith.constant 0 : index
    %c0_6 = arith.constant 0 : index
    %5 = vector.load %arg5[%c0_5, %c0_6] : memref<1x32xf32, #tpu.memory_space<vmem>>, vector<1x32xf32>
    %6 = vector.broadcast %5 : vector<1x32xf32> to vector<128x32xf32>
    %7 = arith.addf %4, %6 : vector<128x32xf32>
    %8 = arith.negf %7 : vector<128x32xf32>
    %9 = math.exp %8 : vector<128x32xf32>
    %cst_7 = arith.constant 1.000000e+00 : f32
    %10 = vector.broadcast %cst_7 : f32 to vector<128x32xf32>
    %11 = arith.addf %10, %9 : vector<128x32xf32>
    %12 = arith.divf %10, %11 : vector<128x32xf32>
    %13 = arith.mulf %7, %12 : vector<128x32xf32>
    %c0_8 = arith.constant 0 : index
    %c0_9 = arith.constant 0 : index
    %14 = vector.load %arg3[%c0_8, %c0_9] : memref<64x32xf32, #tpu.memory_space<vmem>>, vector<64x32xf32>
    %15 = tpu.concatenate %14, %14 in 0 : vector<64x32xf32>, vector<64x32xf32> -> vector<128x32xf32>
    %16 = arith.mulf %13, %15 : vector<128x32xf32>
    %c0_10 = arith.constant 0 : index
    %c0_11 = arith.constant 0 : index
    %17 = vector.load %arg6[%c0_10, %c0_11] : memref<32x128xf32, #tpu.memory_space<vmem>>, vector<32x128xf32>
    %cst_12 = arith.constant dense<0.000000e+00> : vector<128x128xf32>
    %18 = tpu.matmul %16, %17, %cst_12 {dimension_numbers = #tpu.dot_dimension_numbers<[1], [0], [0], [1], [0, 0, 1, 1], [], []>} : vector<128x32xf32>, vector<32x128xf32>, vector<128x128xf32> -> vector<128x128xf32>
    %c0_13 = arith.constant 0 : index
    %c0_14 = arith.constant 0 : index
    %19 = vector.load %arg7[%c0_13, %c0_14] : memref<1x128xf32, #tpu.memory_space<vmem>>, vector<1x128xf32>
    %20 = vector.broadcast %19 : vector<1x128xf32> to vector<128x128xf32>
    %21 = arith.addf %18, %20 : vector<128x128xf32>
    %22 = arith.negf %21 : vector<128x128xf32>
    %23 = math.exp %22 : vector<128x128xf32>
    %cst_15 = arith.constant 1.000000e+00 : f32
    %24 = vector.broadcast %cst_15 : f32 to vector<128x128xf32>
    %25 = arith.addf %24, %23 : vector<128x128xf32>
    %26 = arith.divf %24, %25 : vector<128x128xf32>
    %27 = arith.mulf %21, %26 : vector<128x128xf32>
    %28 = vector.extract_strided_slice %27 {offsets = [0, 0], sizes = [64, 128], strides = [1, 1]} : vector<128x128xf32> to vector<64x128xf32>
    %29 = vector.extract_strided_slice %27 {offsets = [64, 0], sizes = [64, 128], strides = [1, 1]} : vector<128x128xf32> to vector<64x128xf32>
    %30 = arith.addf %28, %29 : vector<64x128xf32>
    %c0_16 = arith.constant 0 : index
    %c0_17 = arith.constant 0 : index
    %31 = vector.load %arg8[%c0_16, %c0_17] : memref<64x128xf32, #tpu.memory_space<vmem>>, vector<64x128xf32>
    tpu.vector_store %arg8[%c0_16, %c0_17], %30 {strides = array<i32>} : memref<64x128xf32, #tpu.memory_space<vmem>>, vector<64x128xf32>,
    return
  }
  func.func @transform_0(%arg0: i32) -> (i32, i32) {
    %c0_i32 = arith.constant 0 : i32
    %c0_i32_0 = arith.constant 0 : i32
    return %arg0, %c0_i32 : i32, i32
  }
  func.func @transform_1(%arg0: i32) -> (i32, i32) {
    %c0_i32 = arith.constant 0 : i32
    %c0_i32_0 = arith.constant 0 : i32
    return %arg0, %c0_i32 : i32, i32
  }
  func.func @transform_2(%arg0: i32) -> (i32, i32) {
    %c0_i32 = arith.constant 0 : i32
    %c0_i32_0 = arith.constant 0 : i32
    return %arg0, %c0_i32 : i32, i32
  }
  func.func @transform_3(%arg0: i32) -> (i32, i32) {
    %c0_i32 = arith.constant 0 : i32
    %c0_i32_0 = arith.constant 0 : i32
    %c0_i32_1 = arith.constant 0 : i32
    return %c0_i32, %c0_i32_0 : i32, i32
  }
  func.func @transform_4(%arg0: i32) -> (i32, i32) {
    %c0_i32 = arith.constant 0 : i32
    %c0_i32_0 = arith.constant 0 : i32
    %c0_i32_1 = arith.constant 0 : i32
    return %c0_i32, %c0_i32_0 : i32, i32
  }
  func.func @transform_5(%arg0: i32) -> (i32, i32) {
    %c0_i32 = arith.constant 0 : i32
    %c0_i32_0 = arith.constant 0 : i32
    %c0_i32_1 = arith.constant 0 : i32
    return %c0_i32, %c0_i32_0 : i32, i32
  }
  func.func @transform_6(%arg0: i32) -> (i32, i32) {
    %c0_i32 = arith.constant 0 : i32
    %c0_i32_0 = arith.constant 0 : i32
    %c0_i32_1 = arith.constant 0 : i32
    return %c0_i32, %c0_i32_0 : i32, i32
  }
  func.func @transform_7(%arg0: i32) -> (i32, i32) {
    %c0_i32 = arith.constant 0 : i32
    %c0_i32_0 = arith.constant 0 : i32
    return %arg0, %c0_i32 : i32, i32
  }
}

</mosaic_0001>

<bundles_post_ra>
// kernel: tpu_custom_call.1
= control target key start
LH: loop header
LB: loop body
LE: loop exit
PB: predicated region body
PF: predicated region fallthrough
CT: control target
= control target key end

     0   :  { %s1470_s0 = inlined_call_operand.vmem [shape: f32[64,128], index: 0, kind: input, shape index: {}]   ;;  %s1471_s1 = inlined_call_operand.vmem [shape: f32[64,128], index: 1, kind: input, shape index: {}]   ;;  %s1472_s2 = inlined_call_operand.vmem [shape: f32[64,32], index: 2, kind: input, shape index: {}]   ;;  %s1473_s3 = inlined_call_operand.vmem [shape: f32[128,32], index: 3, kind: input, shape index: {}]   ;;  %s1474_s4 = inlined_call_operand.vmem [shape: f32[1,32], index: 4, kind: input, shape index: {}]   ;;  %s1475_s5 = inlined_call_operand.vmem [shape: f32[32,128], index: 5, kind: input, shape index: {}]   ;;  %s1476_s6 = inlined_call_operand.vmem [shape: f32[1,128], index: 6, kind: input, shape index: {}]   ;;  %s1477_s7 = inlined_call_operand.hbm [shape: f32[64,128], index: 7, kind: output, shape index: {}]  }
   0x1   :  { %v43_v0 = vld [vmem:[%s1473_s3] sm:$0xff]  ;;  %v44_v1 = vld [vmem:[%s1473_s3 + $0x8] sm:$0xff]  ;;  %v45_v2 = vld [vmem:[%s1473_s3 + $0x10] sm:$0xff] }
   0x2   :  { %v886_v3 = vpack.c.bf16 %v44_v1, %v43_v0  ;;  %v46_v4 = vld [vmem:[%s1473_s3 + $0x18] sm:$0xff]  ;;  %v47_v6 = vld [vmem:[%s1473_s3 + $0x20] sm:$0xff]  ;;  %v48_v7 = vld [vmem:[%s1473_s3 + $0x28] sm:$0xff] }
   0x3   :  { %v890_v5 = vpack.c.bf16 %v46_v4, %v45_v2  ;;  %v894_v8 = vpack.c.bf16 %v48_v7, %v47_v6  ;;  %v27_v9 = vld [vmem:[%s1470_s0] sm:$0xff]  ;;  %v49_v10 = vld [vmem:[%s1473_s3 + $0x30] sm:$0xff]  ;;  %v50_v11 = vld [vmem:[%s1473_s3 + $0x38] sm:$0xff] }
   0x4   :  { %887 = vmatprep.subr.bf16.mxu0 %v886_v3  ;;  %830 = vmatprep.mubr.f32.mxu0 %v27_v9  ;;  %v898_v12 = vpack.c.bf16 %v50_v11, %v49_v10  ;;  %v51_v13 = vld [vmem:[%s1473_s3 + $0x40] sm:$0xff]  ;;  %v52_v14 = vld [vmem:[%s1473_s3 + $0x48] sm:$0xff] }
   0x5   :  { %889 = vmatpush3.bf16.msra.mxu0 %v886_v3 }
   0x6   :  { %891 = vmatprep.subr.bf16.mxu0 %v890_v5 }
   0x9   :  { %893 = vmatpush3.bf16.msra.mxu0 %v890_v5 }
   0xa   :  { %895 = vmatprep.subr.bf16.mxu0 %v894_v8 }
   0xb   :  { %12 = vsyncpa [#allocation3], 0  ;;  %v902_v15 = vpack.c.bf16 %v52_v14, %v51_v13  ;;  %v53_v16 = vld [vmem:[%s1473_s3 + $0x50] sm:$0xff]  ;;  %v54_v17 = vld [vmem:[%s1473_s3 + $0x58] sm:$0xff]  ;;  %vm358_vm0 = vcmask 261120  }
   0xc   :  { %v906_v18 = vpack.c.bf16 %v54_v17, %v53_v16  ;;  %v55_v19 = vld [vmem:[%s1473_s3 + $0x60] sm:$0xff]  ;;  %v56_v20 = vld [vmem:[%s1473_s3 + $0x68] sm:$0xff]  ;;  %v57_v22 = vld [vmem:[%s1473_s3 + $0x70] sm:$0xff] }
   0xd   :  { %897 = vmatpush3.bf16.msra.mxu0 %v894_v8  ;;  %v910_v21 = vpack.c.bf16 %v56_v20, %v55_v19  ;;  %v58_v23 = vld [vmem:[%s1473_s3 + $0x78] sm:$0xff]  ;;  %v28_v25 = vld [vmem:[%s1470_s0 + $0x8] sm:$0xff]  ;;  %v29_v26 = vld [vmem:[%s1470_s0 + $0x10] sm:$0xff] }
   0xe   :  { %899 = vmatprep.subr.bf16.mxu0 %v898_v12  ;;  %v914_v24 = vpack.c.bf16 %v58_v23, %v57_v22  ;;  %v30_v27 = vld [vmem:[%s1470_s0 + $0x18] sm:$0xff]  ;;  %v31_v28 = vld [vmem:[%s1470_s0 + $0x20] sm:$0xff]  ;;  %v32_v29 = vld [vmem:[%s1470_s0 + $0x28] sm:$0xff] }
   0xf   :  { %v33_v30 = vld [vmem:[%s1470_s0 + $0x30] sm:$0xff]  ;;  %v34_v31 = vld [vmem:[%s1470_s0 + $0x38] sm:$0xff]  ;;  %v35_v32 = vld [vmem:[%s1471_s1] sm:$0xff] }
  0x10   :  { %v36_v33 = vld [vmem:[%s1471_s1 + $0x8] sm:$0xff]  ;;  %v37_v34 = vld [vmem:[%s1471_s1 + $0x10] sm:$0xff]  ;;  %v38_v35 = vld [vmem:[%s1471_s1 + $0x18] sm:$0xff] }
  0x11   :  { %901 = vmatpush3.bf16.msra.mxu0 %v898_v12  ;;  %v39_v36 = vld [vmem:[%s1471_s1 + $0x20] sm:$0xff]  ;;  %v40_v37 = vld [vmem:[%s1471_s1 + $0x28] sm:$0xff]  ;;  %v41_v38 = vld [vmem:[%s1471_s1 + $0x30] sm:$0xff] }
  0x12   :  { %903 = vmatprep.subr.bf16.mxu0 %v902_v15  ;;  %v42_v39 = vld [vmem:[%s1471_s1 + $0x38] sm:$0xff]  ;;  %v347_v40 = vld [vmem:[%s1475_s5] sm:$0xff]  ;;  %v348_v41 = vld [vmem:[%s1475_s5 + $0x8] sm:$0xff] }
  0x13   :  { %v918_v42 = vpack.c.bf16 %v348_v41, %v347_v40  ;;  %v349_v43 = vld [vmem:[%s1475_s5 + $0x10] sm:$0xff]  ;;  %v350_v44 = vld [vmem:[%s1475_s5 + $0x18] sm:$0xff]  ;;  %v1235_v46 = vld [vmem:[%s1474_s4] ss:$0 sm:$0xff] }
  0x14   :  { %v922_v45 = vpack.c.bf16 %v350_v44, %v349_v43 }
  0x15   :  { %905 = vmatpush3.bf16.msra.mxu0 %v902_v15  ;;  %919 = vmatprep.subr.bf16.mxu1 %v918_v42 }
  0x16   :  { %907 = vmatprep.subr.bf16.mxu0 %v906_v18  ;;  %921 = vmatpush3.bf16.msra.mxu1 %v918_v42 }
  0x17   :  { %923 = vmatprep.subr.bf16.mxu1 %v922_v45 }
  0x19   :  { %909 = vmatpush3.bf16.msra.mxu0 %v906_v18 }
  0x1a   :  { %911 = vmatprep.subr.bf16.mxu0 %v910_v21  ;;  %925 = vmatpush3.bf16.msra.mxu1 %v922_v45  ;;  %v1300_v45 = vld [vmem:[%s1472_s2] sm:$0xff] }
  0x1d   :  { %913 = vmatpush3.bf16.msra.mxu0 %v910_v21 }
  0x1e   :  { %915 = vmatprep.subr.bf16.mxu0 %v914_v24 }
  0x21   :  { %917 = vmatpush3.bf16.msra.mxu0 %v914_v24 }
  0x24   :  { %831 = vmatmul.mubr.f32.vlgmr.msra.gmra.mrb[0].mxu0 %v28_v25 }
  0x25   :  { %833 = vmatprep.mubr.f32.mxu0 %v29_v26 }
  0x28   :  { %834 = vmatmul.mubr.f32.gmra.mrb[2].mxu0 %v30_v27 }
  0x29   :  { %836 = vmatprep.mubr.f32.mxu0 %v31_v28 }
  0x2c   :  { %837 = vmatmul.mubr.f32.gmra.mrb[4].mxu0 %v32_v29 }
  0x2d   :  { %839 = vmatprep.mubr.f32.mxu0 %v33_v30 }
  0x30   :  { %840 = vmatmul.mubr.f32.gmra.mrb[6].mxu0 %v34_v31 }
  0x31   :  { %842 = vmatprep.mubr.f32.mxu0 %v35_v32 }
  0x34   :  { %843 = vmatmul.mubr.f32.gmra.mrb[8].mxu0 %v36_v33 }
  0x35   :  { %845 = vmatprep.mubr.f32.mxu0 %v37_v34 }
  0x38   :  { %846 = vmatmul.mubr.f32.gmra.mrb[10].mxu0 %v38_v35 }
  0x39   :  { %848 = vmatprep.mubr.f32.mxu0 %v39_v36 }
  0x3c   :  { %849 = vmatmul.mubr.f32.gmra.mrb[12].mxu0 %v40_v37 }
  0x3d   :  { %851 = vmatprep.mubr.f32.mxu0 %v41_v38 }
  0x40   :  { %852 = vmatmul.mubr.f32.gmra.mrb[14].mxu0 %v42_v39 }
  0xf7   :  { %v832_v47 = vpop.f32.mrb[0].mxu0 }
  0xf8   :  { %v1238_v48 = vadd.f32 %v832_v47, %v1235_v46  ;;  %v132_v49 = vpop.f32.mrb[1].mxu0 }
  0xf9   :  { %v1241_v50 = vadd.f32 %v1235_v46, %v132_v49  ;;  %v1305_v49 = vld [vmem:[%s1472_s2 + $0x8] sm:$0xff] }
  0xfa   :  { %v698_v51 = vmul.f32 -1.442695, %v1238_v48 }
  0xfb   :  { %v697_v52 = vmul.f32 -1.442695, %v1241_v50  ;;  %v835_v53 = vpop.f32.mrb[2].mxu0 }
  0xfc   :  { %929 = vpow2.f32 %v698_v51  ;;  %v1246_v54 = vadd.f32 %v835_v53, %v1235_v46  ;;  %v142_v55 = vpop.f32.mrb[3].mxu0 }
  0xfd   :  { %931 = vpow2.f32 %v697_v52  ;;  %v1249_v56 = vadd.f32 %v1235_v46, %v142_v55 }
  0xfe   :  { %v700_v57 = vmul.f32 -1.442695, %v1246_v54 }
  0xff   :  { %v699_v58 = vmul.f32 -1.442695, %v1249_v56  ;;  %v838_v59 = vpop.f32.mrb[4].mxu0 }
 0x100   :  { %933 = vpow2.f32 %v700_v57  ;;  %v1254_v60 = vadd.f32 %v838_v59, %v1235_v46  ;;  %v152_v61 = vpop.f32.mrb[5].mxu0 }
 0x101   :  { %935 = vpow2.f32 %v699_v58  ;;  %v1257_v62 = vadd.f32 %v1235_v46, %v152_v61 }
 0x102   :  { %v702_v63 = vmul.f32 -1.442695, %v1254_v60 }
 0x103   :  { %v701_v0 = vmul.f32 -1.442695, %v1257_v62  ;;  %v841_v1 = vpop.f32.mrb[6].mxu0 }
 0x104   :  { %937 = vpow2.f32 %v702_v63  ;;  %v1262_v2 = vadd.f32 %v841_v1, %v1235_v46  ;;  %v162_v3 = vpop.f32.mrb[7].mxu0 }
 0x105   :  { %939 = vpow2.f32 %v701_v0  ;;  %v1265_v4 = vadd.f32 %v1235_v46, %v162_v3  ;;  %v1324_v3 = vld [vmem:[%s1472_s2 + $0x18] sm:$0xff] }
 0x106   :  { %v930_v5 = vpop.eup %929  ;;  %v704_v6 = vmul.f32 -1.442695, %v1262_v2 }
 0x107   :  { %v932_v7 = vpop.eup %931  ;;  %v260_v8 = vadd.f32 1.0, %v930_v5  ;;  %v703_v9 = vmul.f32 -1.442695, %v1265_v4  ;;  %v844_v10 = vpop.f32.mrb[8].mxu0 }
 0x108   :  { %v259_v11 = vadd.f32 1.0, %v932_v7  ;;  %941 = vpow2.f32 %v704_v6  ;;  %v1270_v12 = vadd.f32 %v844_v10, %v1235_v46  ;;  %v172_v13 = vpop.f32.mrb[9].mxu0 }
 0x109   :  { %943 = vrcp.f32 %v260_v8  ;;  %v1273_v14 = vadd.f32 %v1235_v46, %v172_v13 }
 0x10a   :  { %v934_v15 = vpop.eup %933  ;;  %945 = vrcp.f32 %v259_v11  ;;  %v706_v16 = vmul.f32 -1.442695, %v1270_v12 }
 0x10b   :  { %v936_v17 = vpop.eup %935  ;;  %v262_v18 = vadd.f32 1.0, %v934_v15  ;;  %947 = vpow2.f32 %v703_v9  ;;  %v705_v19 = vmul.f32 -1.442695, %v1273_v14  ;;  %v847_v20 = vpop.f32.mrb[10].mxu0 }
 0x10c   :  { %v261_v21 = vadd.f32 1.0, %v936_v17  ;;  %949 = vpow2.f32 %v706_v16  ;;  %v1278_v22 = vadd.f32 %v847_v20, %v1235_v46  ;;  %v182_v23 = vpop.f32.mrb[11].mxu0  ;;  %v328_v16 = vld [vmem:[%s1472_s2 + $0x28] sm:$0xff] }
 0x10d   :  { %951 = vrcp.f32 %v262_v18  ;;  %v1281_v24 = vadd.f32 %v1235_v46, %v182_v23 }
 0x10e   :  { %v938_v25 = vpop.eup %937  ;;  %953 = vrcp.f32 %v261_v21  ;;  %v708_v26 = vmul.f32 -1.442695, %v1278_v22 }
 0x10f   :  { %v940_v27 = vpop.eup %939  ;;  %v264_v28 = vadd.f32 1.0, %v938_v25  ;;  %955 = vpow2.f32 %v705_v19  ;;  %v707_v29 = vmul.f32 -1.442695, %v1281_v24  ;;  %v850_v30 = vpop.f32.mrb[12].mxu0 }
 0x110   :  { %v263_v31 = vadd.f32 1.0, %v940_v27  ;;  %957 = vpow2.f32 %v708_v26  ;;  %v1286_v32 = vadd.f32 %v850_v30, %v1235_v46  ;;  %v192_v33 = vpop.f32.mrb[13].mxu0  ;;  %v330_v30 = vld [vmem:[%s1472_s2 + $0x38] sm:$0xff] }
 0x111   :  { %959 = vrcp.f32 %v264_v28  ;;  %v1289_v34 = vadd.f32 %v1235_v46, %v192_v33  ;;  %v329_v28 = vld [vmem:[%s1472_s2 + $0x30] sm:$0xff] }
 0x112   :  { %v942_v35 = vpop.eup %941  ;;  %961 = vrcp.f32 %v263_v31  ;;  %v710_v36 = vmul.f32 -1.442695, %v1286_v32 }
 0x113   :  { %v944_v37 = vpop.eup %943  ;;  %v266_v38 = vadd.f32 1.0, %v942_v35  ;;  %963 = vpow2.f32 %v707_v29  ;;  %v709_v39 = vmul.f32 -1.442695, %v1289_v34  ;;  %v853_v40 = vpop.f32.mrb[14].mxu0 }
 0x114   :  { %v946_v41 = vpop.eup %945  ;;  %v308_v42 = vmul.f32 %v944_v37, %v1238_v48  ;;  %965 = vpow2.f32 %v710_v36  ;;  %v1295_v43 = vadd.f32 %v853_v40, %v1235_v46  ;;  %v202_v44 = vpop.f32.mrb[15].mxu0 }
 0x115   :  { %v948_v47 = vpop.eup %947  ;;  %v307_v51 = vmul.f32 %v946_v41, %v1241_v50  ;;  %967 = vrcp.f32 %v266_v38  ;;  %v1309_v48 = vadd.f32 %v1235_v46, %v202_v44  ;;  %v1319_v46 = vld [vmem:[%s1472_s2 + $0x10] sm:$0xff] }
 0x116   :  { %v950_v52 = vpop.eup %949  ;;  %v265_v53 = vadd.f32 1.0, %v948_v47  ;;  %969 = vpow2.f32 %v709_v39  ;;  %v712_v55 = vmul.f32 -1.442695, %v1295_v43  ;;  %v332_v0 = vmul.f32 %v1305_v49, %v308_v42 }
 0x117   :  { %v952_v57 = vpop.eup %951  ;;  %v268_v58 = vadd.f32 1.0, %v950_v52  ;;  %v711_v59 = vmul.f32 -1.442695, %v1309_v48  ;;  %v331_v61 = vmul.f32 %v1300_v45, %v307_v51 }
 0x118   :  { %v954_v63 = vpop.eup %953  ;;  %v310_v50 = vmul.f32 %v952_v57, %v1246_v54  ;;  %971 = vrcp.f32 %v265_v53 }
 0x119   :  { %v956_v1 = vpop.eup %955  ;;  %v309_v5 = vmul.f32 %v954_v63, %v1249_v56  ;;  %973 = vrcp.f32 %v268_v58  ;;  %862 = vmatprep.mubr.msk.f32.mxu1 %vm358_vm0, %v331_v61  ;;  %v327_v56 = vld [vmem:[%s1472_s2 + $0x20] sm:$0xff] }
 0x11a   :  { %v958_v6 = vpop.eup %957  ;;  %v267_v7 = vadd.f32 1.0, %v956_v1  ;;  %975 = vpow2.f32 %v712_v55  ;;  %863 = vmatmul.mubr.msk.f32.vlgmr.msra.gmra.mrb[0].mxu1 %vm358_vm0, %v332_v0  ;;  %v334_v11 = vmul.f32 %v1324_v3, %v310_v50 }
 0x11b   :  { %v960_v54 = vpop.eup %959  ;;  %v333_v8 = vmul.f32 %v1319_v46, %v309_v5  ;;  %v270_v9 = vadd.f32 1.0, %v958_v6  ;;  %977 = vpow2.f32 %v711_v59 }
 0x11c   :  { %v962_v10 = vpop.eup %961  ;;  %v312_v13 = vmul.f32 %v960_v54, %v1254_v60  ;;  %979 = vrcp.f32 %v267_v7 }
 0x11d   :  { %v964_v15 = vpop.eup %963  ;;  %v311_v17 = vmul.f32 %v962_v10, %v1257_v62  ;;  %981 = vrcp.f32 %v270_v9  ;;  %865 = vmatprep.mubr.msk.f32.mxu1 %vm358_vm0, %v333_v8 }
 0x11e   :  { %v966_v18 = vpop.eup %965  ;;  %v269_v19 = vadd.f32 1.0, %v964_v15  ;;  %866 = vmatmul.mubr.msk.f32.gmra.mrb[2].mxu1 %vm358_vm0, %v334_v11  ;;  %v336_v25 = vmul.f32 %v328_v16, %v312_v13 }
 0x11f   :  { %v968_v60 = vpop.eup %967  ;;  %v335_v20 = vmul.f32 %v327_v56, %v311_v17  ;;  %v272_v21 = vadd.f32 1.0, %v966_v18 }
 0x120   :  { %v970_v23 = vpop.eup %969  ;;  %983 = vrcp.f32 %v269_v19  ;;  %v314_v62 = vmul.f32 %v968_v60, %v1262_v2 }
 0x121   :  { %985 = vrcp.f32 %v272_v21  ;;  %v271_v26 = vadd.f32 1.0, %v970_v23  ;;  %868 = vmatprep.mubr.msk.f32.mxu1 %vm358_vm0, %v335_v20 }
 0x122   :  { %v972_v27 = vpop.eup %971  ;;  %869 = vmatmul.mubr.msk.f32.gmra.mrb[4].mxu1 %vm358_vm0, %v336_v25  ;;  %v338_v2 = vmul.f32 %v330_v30, %v314_v62 }
 0x123   :  { %v974_v29 = vpop.eup %973  ;;  %v313_v31 = vmul.f32 %v972_v27, %v1265_v4  ;;  %987 = vrcp.f32 %v271_v26 }
 0x124   :  { %v976_v33 = vpop.eup %975  ;;  %v316_v39 = vmul.f32 %v974_v29, %v1270_v12 }
 0x125   :  { %v978_v35 = vpop.eup %977  ;;  %v337_v36 = vmul.f32 %v329_v28, %v313_v31  ;;  %v274_v37 = vadd.f32 1.0, %v976_v33 }
 0x126   :  { %v980_v38 = vpop.eup %979  ;;  %v273_v40 = vadd.f32 1.0, %v978_v35  ;;  %v340_v47 = vmul.f32 %v1305_v49, %v316_v39 }
 0x127   :  { %v982_v41 = vpop.eup %981  ;;  %v315_v42 = vmul.f32 %v980_v38, %v1273_v14  ;;  %989 = vrcp.f32 %v274_v37  ;;  %871 = vmatprep.mubr.msk.f32.mxu1 %vm358_vm0, %v337_v36 }
 0x128   :  { %991 = vrcp.f32 %v273_v40  ;;  %872 = vmatmul.mubr.msk.f32.gmra.mrb[6].mxu1 %vm358_vm0, %v338_v2  ;;  %v318_v51 = vmul.f32 %v982_v41, %v1278_v22 }
 0x129   :  { %v339_v4 = vmul.f32 %v1300_v45, %v315_v42 }
 0x12a   :  { %v984_v44 = vpop.eup %983  ;;  %v342_v55 = vmul.f32 %v1324_v3, %v318_v51 }
 0x12b   :  { %v986_v52 = vpop.eup %985  ;;  %v317_v12 = vmul.f32 %v984_v44, %v1281_v24  ;;  %874 = vmatprep.mubr.msk.f32.mxu1 %vm358_vm0, %v339_v4 }
 0x12c   :  { %875 = vmatmul.mubr.msk.f32.gmra.mrb[8].mxu1 %vm358_vm0, %v340_v47  ;;  %v320_v57 = vmul.f32 %v986_v52, %v1286_v32 }
 0x12d   :  { %v988_v14 = vpop.eup %987  ;;  %v341_v53 = vmul.f32 %v1319_v46, %v317_v12 }
 0x12e   :  { %v319_v45 = vmul.f32 %v988_v14, %v1289_v34  ;;  %v344_v58 = vmul.f32 %v328_v16, %v320_v57  ;;  %v1376_v34 = vld [vmem:[%s1476_s6] ss:$0 sm:$0xff]  ;;  %s1081_s6 = smov [#allocation2]  }
 0x12f   :  { %877 = vmatprep.mubr.msk.f32.mxu1 %vm358_vm0, %v341_v53  ;;  %s685_s16 = sshll.u32 %s1081_s6, 4  ;;  %s686_s16 = int_to_ptr.vmem [resolvable:$true] %s685_s16 }
 0x130   :  { %v343_v49 = vmul.f32 %v327_v56, %v319_v45  ;;  %878 = vmatmul.mubr.msk.f32.gmra.mrb[10].mxu1 %vm358_vm0, %v342_v55  ;;  %s1057_s17 = scalar_lea.vmem %s686_s16, 1024  ;;  %p1062_p1 = scmp.lt.s32.totalorder %s686_s16, %s686_s16 }
 0x131   :  { %v990_v22 = vpop.eup %989  ;;  %p1058_p0 = scmp.ne.s32.totalorder %s686_s16, %s1057_s17  ;;  %p1063_p2 = scmp.lt.s32.totalorder %s1057_s17, %s1057_s17 }
 0x132   :  { %v992_v24 = vpop.eup %991  ;;  %v322_v59 = vmul.f32 %v990_v22, %v1295_v43  ;;  %880 = vmatprep.mubr.msk.f32.mxu1 %vm358_vm0, %v343_v49 }
 0x133   :  { %v321_v61 = vmul.f32 %v992_v24, %v1309_v48  ;;  %p1064_p3 = por %p1063_p2, %p1062_p1 }
 0x134   :  { %881 = vmatmul.mubr.msk.f32.gmra.mrb[12].mxu1 %vm358_vm0, %v344_v58  ;;  %v346_v32 = vmul.f32 %v330_v30, %v322_v59 }
 0x135   :  { %v345_v63 = vmul.f32 %v329_v28, %v321_v61  ;;  %p1065_p4 = pnand %p1064_p3, %p1058_p0 }
 0x137   :  { %883 = vmatprep.mubr.msk.f32.mxu1 %vm358_vm0, %v345_v63 }
 0x138   :  { %884 = vmatmul.mubr.msk.f32.gmra.mrb[14].mxu1 %vm358_vm0, %v346_v32 }
 0x1ed   :  { %v864_v0 = vpop.f32.mrb[0].mxu1 }
 0x1ee   :  { %v1379_v43 = vadd.f32 %v864_v0, %v1376_v34  ;;  %v473_v50 = vpop.f32.mrb[1].mxu1 }
 0x1ef   :  { %v1383_v3 = vadd.f32 %v1376_v34, %v473_v50 }
 0x1f0   :  { %v731_v48 = vmul.f32 -1.442695, %v1379_v43 }
 0x1f1   :  { %v867_v46 = vpop.f32.mrb[2].mxu1  ;;  %v730_v54 = vmul.f32 -1.442695, %v1383_v3 }
 0x1f2   :  { %v483_v1 = vpop.f32.mrb[3].mxu1  ;;  %993 = vpow2.f32 %v731_v48  ;;  %v1386_v6 = vadd.f32 %v867_v46, %v1376_v34 }
 0x1f3   :  { %v1391_v9 = vadd.f32 %v1376_v34, %v483_v1  ;;  %995 = vpow2.f32 %v730_v54 }
 0x1f4   :  { %v733_v8 = vmul.f32 -1.442695, %v1386_v6 }
 0x1f5   :  { %v870_v5 = vpop.f32.mrb[4].mxu1  ;;  %v732_v15 = vmul.f32 -1.442695, %v1391_v9 }
 0x1f6   :  { %v493_v7 = vpop.f32.mrb[5].mxu1  ;;  %v1394_v10 = vadd.f32 %v870_v5, %v1376_v34  ;;  %997 = vpow2.f32 %v733_v8 }
 0x1f7   :  { %v1397_v13 = vadd.f32 %v1376_v34, %v493_v7  ;;  %999 = vpow2.f32 %v732_v15 }
 0x1f8   :  { %v735_v16 = vmul.f32 -1.442695, %v1394_v10 }
 0x1f9   :  { %v734_v19 = vmul.f32 -1.442695, %v1397_v13 }
 0x1fa   :  { %1001 = vpow2.f32 %v735_v16 }
 0x1fb   :  { %v873_v11 = vpop.f32.mrb[6].mxu1  ;;  %1003 = vpow2.f32 %v734_v19 }
 0x1fc   :  { %v503_v56 = vpop.f32.mrb[7].mxu1  ;;  %v994_v18 = vpop.eup %993  ;;  %v1403_v60 = vadd.f32 %v873_v11, %v1376_v34 }
 0x1fd   :  { %v601_v26 = vadd.f32 1.0, %v994_v18  ;;  %v1413_v27 = vadd.f32 %v1376_v34, %v503_v56  ;;  %v996_v36 = vpop.eup %995 }
 0x1fe   :  { %v737_v29 = vmul.f32 -1.442695, %v1403_v60  ;;  %v600_v4 = vadd.f32 1.0, %v996_v36 }
 0x1ff   :  { %v876_v17 = vpop.f32.mrb[8].mxu1  ;;  %v736_v37 = vmul.f32 -1.442695, %v1413_v27 }
 0x200   :  { %v1406_v20 = vadd.f32 %v876_v17, %v1376_v34  ;;  %v513_v21 = vpop.f32.mrb[9].mxu1  ;;  %v998_v39 = vpop.eup %997 }
 0x201   :  { %v1409_v23 = vadd.f32 %v1376_v34, %v513_v21  ;;  %v603_v47 = vadd.f32 1.0, %v998_v39  ;;  %v1000_v12 = vpop.eup %999 }
 0x202   :  { %v739_v25 = vmul.f32 -1.442695, %v1406_v20  ;;  %v602_v59 = vadd.f32 1.0, %v1000_v12 }
 0x203   :  { %v738_v62 = vmul.f32 -1.442695, %v1409_v23  ;;  %v879_v28 = vpop.f32.mrb[10].mxu1 }
 0x204   :  { %v1418_v30 = vadd.f32 %v879_v28, %v1376_v34  ;;  %v523_v31 = vpop.f32.mrb[11].mxu1  ;;  %1005 = vpow2.f32 %v739_v25  ;;  %v1002_v55 = vpop.eup %1001 }
 0x205   :  { %v1421_v33 = vadd.f32 %v1376_v34, %v523_v31  ;;  %1007 = vpow2.f32 %v738_v62  ;;  %v1004_v45 = vpop.eup %1003  ;;  %v605_v32 = vadd.f32 1.0, %v1002_v55 }
 0x206   :  { %v741_v35 = vmul.f32 -1.442695, %v1418_v30  ;;  %1009 = vrcp.f32 %v601_v26  ;;  %v604_v48 = vadd.f32 1.0, %v1004_v45 }
 0x207   :  { %v740_v38 = vmul.f32 -1.442695, %v1421_v33  ;;  %v882_v2 = vpop.f32.mrb[12].mxu1  ;;  %1011 = vpow2.f32 %v737_v29 }
 0x208   :  { %v1427_v40 = vadd.f32 %v882_v2, %v1376_v34  ;;  %v533_v41 = vpop.f32.mrb[13].mxu1  ;;  %1013 = vpow2.f32 %v741_v35 }
 0x209   :  { %v1430_v42 = vadd.f32 %v1376_v34, %v533_v41  ;;  %1015 = vpow2.f32 %v740_v38 }
 0x20a   :  { %v743_v44 = vmul.f32 -1.442695, %v1427_v40  ;;  %1017 = vpow2.f32 %v736_v37 }
 0x20b   :  { %v742_v51 = vmul.f32 -1.442695, %v1430_v42  ;;  %v885_v52 = vpop.f32.mrb[14].mxu1 }
 0x20c   :  { %1019 = vpow2.f32 %v743_v44  ;;  %v1435_v14 = vadd.f32 %v885_v52, %v1376_v34  ;;  %v543_v53 = vpop.f32.mrb[15].mxu1 }
 0x20d   :  { %1021 = vpow2.f32 %v742_v51  ;;  %v1438_v57 = vadd.f32 %v1376_v34, %v543_v53 }
 0x20e   :  { %1023 = vrcp.f32 %v600_v4  ;;  %v745_v49 = vmul.f32 -1.442695, %v1435_v14  ;;  %v1006_v22 = vpop.eup %1005 }
 0x20f   :  { %1025 = vrcp.f32 %v603_v47  ;;  %v744_v24 = vmul.f32 -1.442695, %v1438_v57  ;;  %v1008_v58 = vpop.eup %1007  ;;  %v609_v61 = vadd.f32 1.0, %v1006_v22 }
 0x210   :  { %1027 = vpow2.f32 %v745_v49  ;;  %v1010_v63 = vpop.eup %1009  ;;  %v608_v0 = vadd.f32 1.0, %v1008_v58 }
 0x211   :  { %1029 = vpow2.f32 %v744_v24  ;;  %v1012_v50 = vpop.eup %1011  ;;  %v649_v29 = vmul.f32 %v1010_v63, %v1379_v43 }
 0x212   :  { %1031 = vrcp.f32 %v609_v61  ;;  %v1014_v34 = vpop.eup %1013  ;;  %v607_v11 = vadd.f32 1.0, %v1012_v50 }
 0x213   :  { %1033 = vrcp.f32 %v608_v0  ;;  %v1016_v46 = vpop.eup %1015  ;;  %v611_v1 = vadd.f32 1.0, %v1014_v34 }
 0x214   :  { %1035 = vrcp.f32 %v602_v59  ;;  %v1018_v5 = vpop.eup %1017  ;;  %v610_v7 = vadd.f32 1.0, %v1016_v46 }
 0x215   :  { %1037 = vrcp.f32 %v605_v32  ;;  %v606_v16 = vadd.f32 1.0, %v1018_v5 }
 0x216   :  { %v1020_v54 = vpop.eup %1019  ;;  %1039 = vrcp.f32 %v611_v1 }
 0x217   :  { %v1022_v8 = vpop.eup %1021  ;;  %1041 = vrcp.f32 %v610_v7  ;;  %v613_v56 = vadd.f32 1.0, %v1020_v54 }
 0x218   :  { %v1024_v15 = vpop.eup %1023  ;;  %1043 = vrcp.f32 %v604_v48  ;;  %v612_v17 = vadd.f32 1.0, %v1022_v8 }
 0x219   :  { %v1026_v18 = vpop.eup %1025  ;;  %1045 = vrcp.f32 %v613_v56  ;;  %v648_v36 = vmul.f32 %v1024_v15, %v1383_v3 }
 0x21a   :  { %v1028_v19 = vpop.eup %1027  ;;  %1047 = vrcp.f32 %v612_v17  ;;  %v651_v44 = vmul.f32 %v1026_v18, %v1386_v6 }
 0x21b   :  { %v1030_v21 = vpop.eup %1029  ;;  %1049 = vrcp.f32 %v607_v11  ;;  %v615_v25 = vadd.f32 1.0, %v1028_v19 }
 0x21c   :  { %v1032_v26 = vpop.eup %1031  ;;  %1051 = vrcp.f32 %v606_v16  ;;  %v614_v62 = vadd.f32 1.0, %v1030_v21 }
 0x21d   :  { %v1034_v28 = vpop.eup %1033  ;;  %v657_v31 = vmul.f32 %v1032_v26, %v1406_v20  ;;  %1053 = vrcp.f32 %v615_v25 }
 0x21e   :  { %v1036_v35 = vpop.eup %1035  ;;  %v656_v37 = vmul.f32 %v1034_v28, %v1409_v23  ;;  %1055 = vrcp.f32 %v614_v62 }
 0x21f   :  { %v1038_v38 = vpop.eup %1037  ;;  %v665_v2 = vadd.f32 %v657_v31, %v649_v29  ;;  %v650_v20 = vmul.f32 %v1036_v35, %v1391_v9 }
 0x220   :  { %v1040_v39 = vpop.eup %1039  ;;  %v664_v41 = vadd.f32 %v656_v37, %v648_v36  ;;  %v653_v12 = vmul.f32 %v1038_v38, %v1394_v10 }
 0x221   :  { %v1042_v4 = vpop.eup %1041  ;;  %673 = vst [vmem:[#allocation2 + $0x8] sm:$0xff] %v665_v2  ;;  %v659_v47 = vmul.f32 %v1040_v39, %v1418_v30 }
 0x222   :  { %v1044_v43 = vpop.eup %1043  ;;  %672 = vst [vmem:[#allocation2] sm:$0xff] %v664_v41  ;;  %v658_v51 = vmul.f32 %v1042_v4, %v1421_v33 }
 0x223   :  { %v1046_v3 = vpop.eup %1045  ;;  %v667_v52 = vadd.f32 %v659_v47, %v651_v44  ;;  %v652_v6 = vmul.f32 %v1044_v43, %v1397_v13 }
 0x224   :  { %v1048_v23 = vpop.eup %1047  ;;  %v666_v53 = vadd.f32 %v658_v51, %v650_v20  ;;  %v661_v55 = vmul.f32 %v1046_v3, %v1427_v40 }
 0x225   :  { %v1050_v45 = vpop.eup %1049  ;;  %675 = vst [vmem:[#allocation2 + $0x18] sm:$0xff] %v667_v52  ;;  %v660_v30 = vmul.f32 %v1048_v23, %v1430_v42 }
 0x226   :  { %v1052_v49 = vpop.eup %1051  ;;  %674 = vst [vmem:[#allocation2 + $0x10] sm:$0xff] %v666_v53  ;;  %v669_v9 = vadd.f32 %v661_v55, %v653_v12  ;;  %v655_v58 = vmul.f32 %v1050_v45, %v1403_v60 }
 0x227   :  { %v1054_v22 = vpop.eup %1053  ;;  %v668_v24 = vadd.f32 %v660_v30, %v652_v6  ;;  %v654_v40 = vmul.f32 %v1052_v49, %v1413_v27 }
 0x228   :  { %v1056_v33 = vpop.eup %1055  ;;  %677 = vst [vmem:[#allocation2 + $0x28] sm:$0xff] %v669_v9  ;;  %v663_v10 = vmul.f32 %v1054_v22, %v1435_v14 }
 0x229   :  { %676 = vst [vmem:[#allocation2 + $0x20] sm:$0xff] %v668_v24  ;;  %v662_v13 = vmul.f32 %v1056_v33, %v1438_v57 }
 0x22a   :  { %v671_v59 = vadd.f32 %v663_v10, %v655_v58 }
 0x22b   :  { %v670_v42 = vadd.f32 %v662_v13, %v654_v40 }
 0x22c   :  { %679 = vst [vmem:[#allocation2 + $0x38] sm:$0xff] %v671_v59 }
 0x22d   :  { %678 = vst [vmem:[#allocation2 + $0x30] sm:$0xff] %v670_v42 }
 0x22e   :  { %1068 = shalt.err (!%p1065_p4)
}
 0x22f   :  { %s1069_s19 = scalar_lea.hbm %s1477_s7, 1024 }
 0x230   :  { %p1070_p5 = scmp.ne.s32.totalorder %s1477_s7, %s1069_s19  ;;  %p1073_p6 = scmp.lt.u32.totalorder %s1069_s19, %s1477_s7 }
 0x232   :  { %p1075_p7 = pnand %p1073_p6, %p1070_p5 }
 0x234   :  { %1078 = shalt.err (!%p1075_p7)
}
 0x235   :  { %s1082_s1 = smov 128   ;;  %s1083_s24 = smov 8  }
 0x236   :  { %691 = dma.vmem_to_hbm [thread:$0]  %s686_s16, 1024, %s1477_s7, [#allocation3], %s1082_s1, %s1082_s1, %s1083_s24  }
 0x237   :  { %1079 = dma.done.wait [#allocation3], 1024  }
 0x238   :  { %1080 = vsyncadd [#allocation3], 4294966272 }
 0x239   :  { %695 = vsyncpa [#allocation3], 1 }

</bundles_post_ra>
